<compile_context>
chip_gen: v6e
topology: v6e:2x2x1
jax: 0.10.0
libtpu: 0.0.40
codegen_flags: <defaults>
</compile_context>

<pallas_src>
import functools
import math

import jax
import jax.numpy as jnp
from jax.experimental import pallas as pl
from jax.experimental.pallas import tpu as pltpu

# ---- EHMLoss hyperparameters (match the PyTorch __init__ defaults) ---------
NUM_REFINEMENT_STAGES = 1
N_LOSSES = NUM_REFINEMENT_STAGES + 1
GMSE_W = 1.0
AWING_W = 1.0
SIGMA = 4.0
ALPHA = 2.1
OMEGA = 14.0
EPSILON = 1.0
THETA = 0.5

LANE = 128    # vreg lane width
SUBLANE = 8   # vreg sublane count (f32)


def _round_up(x: int, m: int) -> int:
    return -(-x // m) * m


def _num_tensorcores() -> int:
    """Best-effort query of TensorCores per chip (v7x has 2). Falls back to 1."""
    try:
        info = pltpu.get_tpu_info()
        for attr in ("num_cores", "core_count", "num_cores_per_chip",
                     "tensorcores_per_chip", "num_tensorcores"):
            v = getattr(info, attr, None)
            if isinstance(v, int) and v >= 1:
                return max(1, min(2, v))
    except Exception:
        pass
    return 1


def _ehm_loss_kernel(pred_ref, target_ref, out_ref, acc_ref, *, approx_recip):
    """One grid step: accumulate gmse+awing contributions of one row-tile.

    pred_ref:   (S, TR, LANE)  all stages of one row-tile of the prediction
    target_ref: (TR, LANE)     matching row-tile of the target
    out_ref:    (1, 8, LANE)   per-split partial accumulator (written at last step)
    acc_ref:    (8, LANE)      f32 VMEM accumulator, resident across the
                               inner ("arbitrary") grid axis
    """
    r = pl.program_id(1)

    @pl.when(r == 0)
    def _():
        acc_ref[...] = jnp.zeros_like(acc_ref)

    t = target_ref[...].astype(jnp.float32)

    # ---- target-only adaptive-wing terms, hoisted across stages ------------
    expo = jnp.float32(ALPHA) - t                       # alpha - target (>= 1.1 for t in [0,1])
    ln_base = math.log(THETA / EPSILON)                 # ln(0.5), compile-time const
    pow_a = jnp.exp(expo * jnp.float32(ln_base))        # (theta/eps)^(alpha-t), one exp
    pow_am1 = pow_a * jnp.float32(EPSILON / THETA)      # (theta/eps)^(alpha-t-1), no extra exp
    inv_1p = pl.reciprocal(1.0 + pow_a, approx=approx_recip)
    A = jnp.float32(OMEGA / EPSILON) * inv_1p * expo * pow_am1
    C = jnp.float32(THETA) * A - jnp.float32(OMEGA) * jnp.log1p(pow_a)

    gmse_scale = jnp.float32(-1.0 / (2.0 * SIGMA * SIGMA))

    # ---- per-stage terms (S is small and static -> Python unroll) ----------
    total = None
    for s in range(pred_ref.shape[0]):
        p = pred_ref[s].astype(jnp.float32)
        diff = p - t

        # GMSE
        sq = diff * diff
        gmse = sq * jnp.exp(sq * gmse_scale)

        # Adaptive wing
        delta = jnp.abs(diff)
        d = delta if EPSILON == 1.0 else delta * jnp.float32(1.0 / EPSILON)
        # d ** expo as exp(expo * log(d)): safe because expo >= 1.1 > 0 for
        # targets in [0, 1]; d == 0 gives exp(-inf) == 0 (no NaN), matching pow.
        d_pow = jnp.exp(expo * jnp.log(d))
        small = jnp.float32(OMEGA) * jnp.log1p(d_pow)
        large = A * delta - C
        awing = jnp.where(delta < jnp.float32(THETA), small, large)

        contrib = jnp.float32(GMSE_W) * gmse + jnp.float32(AWING_W) * awing
        total = contrib if total is None else total + contrib

    # Fold the (TR, LANE) tile into the vreg-shaped accumulator: the
    # leading-axis sum is pure VPU vreg adds (no XLU, no big acc loads/stores).
    tr = total.shape[0]
    acc_ref[...] += total.reshape(tr // SUBLANE, SUBLANE, LANE).sum(axis=0)

    # Aligned (8, 128) store, once per split.
    @pl.when(r == pl.num_programs(1) - 1)
    def _():
        out_ref[0] = acc_ref[...]


@functools.partial(jax.jit,
                   static_argnames=("tile_rows", "num_splits", "approx_recip"))
def _ehm_loss_impl(pred, target, tile_rows, num_splits, approx_recip):
    S = pred.shape[0]
    assert pred.shape[1:] == target.shape, "all stages must share target's shape"
    n_elems = int(math.prod(target.shape))

    # ---- tiling / padding -----------------------------------------------
    rows_total = -(-n_elems // LANE)
    rows_per_split = _round_up(-(-rows_total // num_splits), SUBLANE)

    # Distribute rows evenly over the minimal number of tiles whose row count
    # is <= tile_rows; avoids both tiny tiles and near-2x padding when
    # rows_per_split slightly exceeds tile_rows.
    tile_cap = max(SUBLANE, (int(tile_rows) // SUBLANE) * SUBLANE)
    n_tiles = -(-rows_per_split // tile_cap)
    tr = _round_up(-(-rows_per_split // n_tiles), SUBLANE)
    rows_per_split = n_tiles * tr
    inner = n_tiles
    rows_padded = rows_per_split * num_splits
    padded_elems = rows_padded * LANE

    # Zero padding contributes exactly 0 to both GMSE and adaptive-wing
    # (pred == target == 0 -> diff == 0 -> gmse == 0, awing == omega*log1p(0) == 0).
    flat_pred = pred.reshape(S, n_elems)
    flat_target = target.reshape(n_elems)
    if padded_elems > n_elems:
        pad = padded_elems - n_elems
        flat_pred = jnp.pad(flat_pred, ((0, 0), (0, pad)))
        flat_target = jnp.pad(flat_target, ((0, pad),))
    pred3d = flat_pred.reshape(S, rows_padded, LANE)
    target2d = flat_target.reshape(rows_padded, LANE)

    kernel = functools.partial(_ehm_loss_kernel, approx_recip=approx_recip)

    partials = pl.pallas_call(
        kernel,
        out_shape=jax.ShapeDtypeStruct((num_splits, SUBLANE, LANE), jnp.float32),
        grid_spec=pltpu.PrefetchScalarGridSpec(
            num_scalar_prefetch=0,
            grid=(num_splits, inner),
            in_specs=[
                # All stages of one row tile -> target streamed once per tile.
                pl.BlockSpec((S, tr, LANE), lambda c, r: (0, c * inner + r, 0)),
                pl.BlockSpec((tr, LANE), lambda c, r: (c * inner + r, 0)),
            ],
            out_specs=pl.BlockSpec((1, SUBLANE, LANE), lambda c, r: (c, 0, 0)),
            scratch_shapes=[pltpu.VMEM((SUBLANE, LANE), jnp.float32)],
        ),
        compiler_params=pltpu.CompilerParams(
            # Inner (reduction) axis must stay "arbitrary"; the split axis is
            # independent and may be sharded across TensorCores on multi-TC chips.
            dimension_semantics=("parallel", "arbitrary"),
            # Default tile_rows=2048 fits every chip's default scoped-VMEM
            # budget; raise vmem_limit_bytes here if you push tile_rows to 4096
            # on v6e (keep total footprint < ~28 MiB on v7x).
        ),
    )(pred3d, target2d)

    # Each stage's .mean() divides by the same N, so one division at the end.
    return jnp.sum(partials) / jnp.float32(n_elems)


def ehm_loss(pred, target, tile_rows=2048, num_splits=None, approx_recip=True):
    """pred: (S, B, C, H, W) (any stage count / dtype incl. bf16),
    target: (B, C, H, W). Returns scalar f32 loss."""
    if num_splits is None:
        num_splits = _num_tensorcores()
    num_splits = max(1, int(num_splits))
    return _ehm_loss_impl(pred, target,
                          tile_rows=int(tile_rows),
                          num_splits=num_splits,
                          approx_recip=bool(approx_recip))


def _ehm_loss_reference(pred, target):
    """Pure-JAX reference mirroring the PyTorch forward, for sanity checking."""
    total = jnp.float32(0.0)
    t = target.astype(jnp.float32)
    for s in range(pred.shape[0]):
        p = pred[s].astype(jnp.float32)
        sq = (p - t) ** 2
        gmse = jnp.mean(sq * jnp.exp(-sq / (2 * SIGMA ** 2)))
        delta = jnp.abs(t - p)
        expo = ALPHA - t
        pow_a = jnp.power(THETA / EPSILON, expo)
        A = (OMEGA * (1.0 / (1.0 + pow_a)) * expo
             * jnp.power(THETA / EPSILON, expo - 1.0) * (1.0 / EPSILON))
        C = THETA * A - OMEGA * jnp.log(1.0 + pow_a)
        awing = jnp.mean(
            jnp.where(delta < THETA,
                      OMEGA * jnp.log(1.0 + jnp.power(delta / EPSILON, expo)),
                      A * delta - C))
        total = total + GMSE_W * gmse + AWING_W * awing
    return total


if __name__ == "__main__":
    key = jax.random.PRNGKey(0)
    k_pred, k_target = jax.random.split(key)

    B, C, H, W = 2, 4, 16, 16
    # pred has one entry per loss stage: shape (n_losses, B, C, H, W)
    pred = jax.random.uniform(k_pred, (N_LOSSES, B, C, H, W), jnp.float32)
    # target heatmap in [0, 1]
    target = jax.random.uniform(k_target, (B, C, H, W), jnp.float32)

    ref = _ehm_loss_reference(pred, target)

    # Exact-reciprocal path: bit-tight against the reference.
    loss_exact = jax.block_until_ready(ehm_loss(pred, target, approx_recip=False))
    assert jnp.allclose(loss_exact, ref, rtol=1e-5, atol=1e-5), (loss_exact, ref)

    # Default (approx EUP reciprocal) path: slightly looser tolerance only
    # because of the hardware approximate reciprocal; math is identical.
    loss = jax.block_until_ready(ehm_loss(pred, target))
    assert jnp.allclose(loss, ref, rtol=5e-3, atol=1e-3), (loss, ref)

    # Tail-padding path: heatmap whose element count is not a multiple of 1024.
    k1, k2 = jax.random.split(k_target)
    pred_odd = jax.random.uniform(k1, (N_LOSSES, 1, 3, 9, 7), jnp.float32)
    target_odd = jax.random.uniform(k2, (1, 3, 9, 7), jnp.float32)
    loss_odd = jax.block_until_ready(ehm_loss(pred_odd, target_odd))
    ref_odd = _ehm_loss_reference(pred_odd, target_odd)
    assert jnp.allclose(loss_odd, ref_odd, rtol=5e-3, atol=1e-3), (loss_odd, ref_odd)

    print("KERNEL_OK")
</pallas_src>

<mosaic_0001>
module attributes {stable_mosaic.version = 11 : i64} {
  func.func @_ehm_loss_kernel(%arg0: i32, %arg1: i32, %arg2: memref<2x16x128xf32, #tpu.memory_space<vmem>>, %arg3: memref<16x128xf32, #tpu.memory_space<vmem>>, %arg4: memref<1x8x128xf32, #tpu.memory_space<vmem>>, %arg5: memref<8x128xf32, #tpu.memory_space<vmem>>) attributes {dimension_semantics = [#tpu.dimension_semantics<parallel>, #tpu.dimension_semantics<arbitrary>], iteration_bounds = array<i64: 1, 1>, scalar_prefetch = 0 : i64, scratch_operands = 1 : i64, tpu.core_type = #tpu.core_type<tc>, window_params = [{transform_indices = @transform_0, window_bounds = array<i64: 2, 16, 128>}, {transform_indices = @transform_1, window_bounds = array<i64: 16, 128>}, {transform_indices = @transform_2, window_bounds = array<i64: 1, 8, 128>}]} {
    %c0_i32 = arith.constant 0 : i32
    %0 = arith.cmpi eq, %arg1, %c0_i32 : i32
    %1 = arith.extui %0 : i1 to i32
    %c0_i32_0 = arith.constant 0 : i32
    %2 = arith.cmpi ne, %1, %c0_i32_0 : i32
    scf.if %2 {
      %cst_30 = arith.constant 0.000000e+00 : f32
      %83 = vector.broadcast %cst_30 : f32 to vector<8x128xf32>
      %c0_31 = arith.constant 0 : index
      %c0_32 = arith.constant 0 : index
      %84 = vector.load %arg5[%c0_31, %c0_32] : memref<8x128xf32, #tpu.memory_space<vmem>>, vector<8x128xf32>
      tpu.vector_store %arg5[%c0_31, %c0_32], %83 {strides = array<i32>} : memref<8x128xf32, #tpu.memory_space<vmem>>, vector<8x128xf32>,
    } else {
    }
    %c0 = arith.constant 0 : index
    %c0_1 = arith.constant 0 : index
    %3 = vector.load %arg3[%c0, %c0_1] : memref<16x128xf32, #tpu.memory_space<vmem>>, vector<16x128xf32>
    %cst = arith.constant 2.100000e+00 : f32
    %4 = vector.broadcast %cst : f32 to vector<16x128xf32>
    %5 = arith.subf %4, %3 : vector<16x128xf32>
    %cst_2 = arith.constant -0.693147182 : f32
    %6 = vector.broadcast %cst_2 : f32 to vector<16x128xf32>
    %7 = arith.mulf %5, %6 : vector<16x128xf32>
    %8 = math.exp %7 : vector<16x128xf32>
    %cst_3 = arith.constant 2.000000e+00 : f32
    %9 = vector.broadcast %cst_3 : f32 to vector<16x128xf32>
    %10 = arith.mulf %8, %9 : vector<16x128xf32>
    %cst_4 = arith.constant 1.000000e+00 : f32
    %11 = vector.broadcast %cst_4 : f32 to vector<16x128xf32>
    %12 = arith.addf %11, %8 : vector<16x128xf32>
    %13 = tpu.reciprocal %12 : vector<16x128xf32> -> vector<16x128xf32>
    %cst_5 = arith.constant 1.400000e+01 : f32
    %14 = vector.broadcast %cst_5 : f32 to vector<16x128xf32>
    %15 = arith.mulf %14, %13 : vector<16x128xf32>
    %16 = arith.mulf %15, %5 : vector<16x128xf32>
    %17 = arith.mulf %16, %10 : vector<16x128xf32>
    %cst_6 = arith.constant 5.000000e-01 : f32
    %18 = vector.broadcast %cst_6 : f32 to vector<16x128xf32>
    %19 = arith.mulf %18, %17 : vector<16x128xf32>
    %20 = math.log1p %8 : vector<16x128xf32>
    %cst_7 = arith.constant 1.400000e+01 : f32
    %21 = vector.broadcast %cst_7 : f32 to vector<16x128xf32>
    %22 = arith.mulf %21, %20 : vector<16x128xf32>
    %23 = arith.subf %19, %22 : vector<16x128xf32>
    %c0_8 = arith.constant 0 : index
    %c0_9 = arith.constant 0 : index
    %c0_10 = arith.constant 0 : index
    %24 = vector.load %arg2[%c0_8, %c0_9, %c0_10] : memref<2x16x128xf32, #tpu.memory_space<vmem>>, vector<1x16x128xf32>
    %25 = vector.shape_cast %24 : vector<1x16x128xf32> to vector<16x128xf32>
    %26 = arith.subf %25, %3 : vector<16x128xf32>
    %27 = arith.mulf %26, %26 : vector<16x128xf32>
    %cst_11 = arith.constant -3.125000e-02 : f32
    %28 = vector.broadcast %cst_11 : f32 to vector<16x128xf32>
    %29 = arith.mulf %27, %28 : vector<16x128xf32>
    %30 = math.exp %29 : vector<16x128xf32>
    %31 = arith.mulf %27, %30 : vector<16x128xf32>
    %32 = math.absf %26 : vector<16x128xf32>
    %33 = math.log %32 : vector<16x128xf32>
    %34 = arith.mulf %5, %33 : vector<16x128xf32>
    %35 = math.exp %34 : vector<16x128xf32>
    %36 = math.log1p %35 : vector<16x128xf32>
    %cst_12 = arith.constant 1.400000e+01 : f32
    %37 = vector.broadcast %cst_12 : f32 to vector<16x128xf32>
    %38 = arith.mulf %37, %36 : vector<16x128xf32>
    %39 = arith.mulf %17, %32 : vector<16x128xf32>
    %40 = arith.subf %39, %23 : vector<16x128xf32>
    %cst_13 = arith.constant 5.000000e-01 : f32
    %41 = vector.broadcast %cst_13 : f32 to vector<16x128xf32>
    %42 = arith.cmpf olt, %32, %41 : vector<16x128xf32>
    %43 = arith.select %42, %38, %40 : vector<16x128xi1>, vector<16x128xf32>
    %cst_14 = arith.constant 1.000000e+00 : f32
    %44 = vector.broadcast %cst_14 : f32 to vector<16x128xf32>
    %45 = arith.mulf %44, %31 : vector<16x128xf32>
    %cst_15 = arith.constant 1.000000e+00 : f32
    %46 = vector.broadcast %cst_15 : f32 to vector<16x128xf32>
    %47 = arith.mulf %46, %43 : vector<16x128xf32>
    %48 = arith.addf %45, %47 : vector<16x128xf32>
    %c1 = arith.constant 1 : index
    %c0_16 = arith.constant 0 : index
    %c0_17 = arith.constant 0 : index
    %49 = vector.load %arg2[%c1, %c0_16, %c0_17] : memref<2x16x128xf32, #tpu.memory_space<vmem>>, vector<1x16x128xf32>
    %50 = vector.shape_cast %49 : vector<1x16x128xf32> to vector<16x128xf32>
    %51 = arith.subf %50, %3 : vector<16x128xf32>
    %52 = arith.mulf %51, %51 : vector<16x128xf32>
    %cst_18 = arith.constant -3.125000e-02 : f32
    %53 = vector.broadcast %cst_18 : f32 to vector<16x128xf32>
    %54 = arith.mulf %52, %53 : vector<16x128xf32>
    %55 = math.exp %54 : vector<16x128xf32>
    %56 = arith.mulf %52, %55 : vector<16x128xf32>
    %57 = math.absf %51 : vector<16x128xf32>
    %58 = math.log %57 : vector<16x128xf32>
    %59 = arith.mulf %5, %58 : vector<16x128xf32>
    %60 = math.exp %59 : vector<16x128xf32>
    %61 = math.log1p %60 : vector<16x128xf32>
    %cst_19 = arith.constant 1.400000e+01 : f32
    %62 = vector.broadcast %cst_19 : f32 to vector<16x128xf32>
    %63 = arith.mulf %62, %61 : vector<16x128xf32>
    %64 = arith.mulf %17, %57 : vector<16x128xf32>
    %65 = arith.subf %64, %23 : vector<16x128xf32>
    %cst_20 = arith.constant 5.000000e-01 : f32
    %66 = vector.broadcast %cst_20 : f32 to vector<16x128xf32>
    %67 = arith.cmpf olt, %57, %66 : vector<16x128xf32>
    %68 = arith.select %67, %63, %65 : vector<16x128xi1>, vector<16x128xf32>
    %cst_21 = arith.constant 1.000000e+00 : f32
    %69 = vector.broadcast %cst_21 : f32 to vector<16x128xf32>
    %70 = arith.mulf %69, %56 : vector<16x128xf32>
    %cst_22 = arith.constant 1.000000e+00 : f32
    %71 = vector.broadcast %cst_22 : f32 to vector<16x128xf32>
    %72 = arith.mulf %71, %68 : vector<16x128xf32>
    %73 = arith.addf %70, %72 : vector<16x128xf32>
    %74 = arith.addf %48, %73 : vector<16x128xf32>
    %c0_23 = arith.constant 0 : index
    %c0_24 = arith.constant 0 : index
    %75 = vector.load %arg5[%c0_23, %c0_24] : memref<8x128xf32, #tpu.memory_space<vmem>>, vector<8x128xf32>
    %76 = vector.shape_cast %74 : vector<16x128xf32> to vector<2x8x128xf32>
    %cst_25 = arith.constant dense<0.000000e+00> : vector<8x128xf32>
    %77 = vector.multi_reduction <add>, %76, %cst_25 [0] : vector<2x8x128xf32> to vector<8x128xf32>
    %78 = arith.addf %75, %77 : vector<8x128xf32>
    %c0_26 = arith.constant 0 : index
    %c0_27 = arith.constant 0 : index
    %79 = vector.load %arg5[%c0_26, %c0_27] : memref<8x128xf32, #tpu.memory_space<vmem>>, vector<8x128xf32>
    tpu.vector_store %arg5[%c0_26, %c0_27], %78 {strides = array<i32>} : memref<8x128xf32, #tpu.memory_space<vmem>>, vector<8x128xf32>,
    %c0_i32_28 = arith.constant 0 : i32
    %80 = arith.cmpi eq, %arg1, %c0_i32_28 : i32
    %81 = arith.extui %80 : i1 to i32
    %c0_i32_29 = arith.constant 0 : i32
    %82 = arith.cmpi ne, %81, %c0_i32_29 : i32
    scf.if %82 {
      %c0_30 = arith.constant 0 : index
      %c0_31 = arith.constant 0 : index
      %83 = vector.load %arg5[%c0_30, %c0_31] : memref<8x128xf32, #tpu.memory_space<vmem>>, vector<8x128xf32>
      %c0_32 = arith.constant 0 : index
      %c0_33 = arith.constant 0 : index
      %c0_34 = arith.constant 0 : index
      %84 = vector.load %arg4[%c0_32, %c0_33, %c0_34] : memref<1x8x128xf32, #tpu.memory_space<vmem>>, vector<1x8x128xf32>
      %85 = vector.shape_cast %84 : vector<1x8x128xf32> to vector<8x128xf32>
      %86 = vector.shape_cast %83 : vector<8x128xf32> to vector<1x8x128xf32>
      tpu.vector_store %arg4[%c0_32, %c0_33, %c0_34], %86 {strides = array<i32>} : memref<1x8x128xf32, #tpu.memory_space<vmem>>, vector<1x8x128xf32>,
    } else {
    }
    return
  }
  func.func @transform_0(%arg0: i32, %arg1: i32) -> (i32, i32, i32) {
    %c1_i32 = arith.constant 1 : i32
    %0 = arith.muli %arg0, %c1_i32 : i32
    %1 = arith.addi %0, %arg1 : i32
    %c0_i32 = arith.constant 0 : i32
    %c0_i32_0 = arith.constant 0 : i32
    %c0_i32_1 = arith.constant 0 : i32
    return %c0_i32, %1, %c0_i32_0 : i32, i32, i32
  }
  func.func @transform_1(%arg0: i32, %arg1: i32) -> (i32, i32) {
    %c1_i32 = arith.constant 1 : i32
    %0 = arith.muli %arg0, %c1_i32 : i32
    %1 = arith.addi %0, %arg1 : i32
    %c0_i32 = arith.constant 0 : i32
    %c0_i32_0 = arith.constant 0 : i32
    return %1, %c0_i32 : i32, i32
  }
  func.func @transform_2(%arg0: i32, %arg1: i32) -> (i32, i32, i32) {
    %c0_i32 = arith.constant 0 : i32
    %c0_i32_0 = arith.constant 0 : i32
    %c0_i32_1 = arith.constant 0 : i32
    return %arg0, %c0_i32, %c0_i32_0 : i32, i32, i32
  }
}

</mosaic_0001>

<bundles_post_ra>
// kernel: _ehm_loss_impl.1
= control target key start
LH: loop header
LB: loop body
LE: loop exit
PB: predicated region body
PF: predicated region fallthrough
CT: control target
= control target key end

     0   :  { %s430_s0 = inlined_call_operand.vmem [shape: f32[2,16,128], index: 0, kind: input, shape index: {}]   ;;  %s431_s1 = inlined_call_operand.vmem [shape: f32[16,128], index: 1, kind: input, shape index: {}]   ;;  %s432_s2 = inlined_call_operand.vmem [shape: f32[1,8,128], index: 2, kind: output, shape index: {}]  }
   0x1   :  { %v60_v0 = vld [vmem:[%s431_s1] sm:$0xff]  ;;  %v61_v1 = vld [vmem:[%s431_s1 + $0x8] sm:$0xff]  ;;  %v246_v7 = vld [vmem:[%s430_s0 + $0x10] sm:$0xff] }
   0x2   :  { %v106_v2 = vld [vmem:[%s430_s0] sm:$0xff]  ;;  %v316_v3 = vsub.f32 2.1, %v60_v0  ;;  %v318_v4 = vsub.f32 2.1, %v61_v1  ;;  %v107_v5 = vld [vmem:[%s430_s0 + $0x8] sm:$0xff]  ;;  %v165_v14 = vsub.f32 %v246_v7, %v60_v0 }
   0x3   :  { %v108_v6 = vsub.f32 %v106_v2, %v60_v0  ;;  %v109_v8 = vsub.f32 %v107_v5, %v61_v1  ;;  %v247_v9 = vld [vmem:[%s430_s0 + $0x18] sm:$0xff] }
   0x4   :  { %v64_v10 = vmul.f32 -0.6931472, %v316_v3  ;;  %v65_v11 = vmul.f32 -0.6931472, %v318_v4  ;;  %v166_v17 = vsub.f32 %v247_v9, %v61_v1  ;;  %v337_v18 = vand.u32 2147483647, %v165_v14 }
   0x5   :  { %v331_v12 = vand.u32 2147483647, %v108_v6  ;;  %v333_v13 = vand.u32 2147483647, %v109_v8  ;;  %v352_v37 = vmul.f32 %v108_v6, %v108_v6  ;;  %v355_v40 = vmul.f32 %v109_v8, %v109_v8 }
   0x6   :  { %v66_v15 = vmul.f32 1.442695, %v64_v10  ;;  %v68_v16 = vmul.f32 1.442695, %v65_v11  ;;  %v339_v19 = vand.u32 2147483647, %v166_v17  ;;  %v358_v43 = vmul.f32 %v165_v14, %v165_v14 }
   0x7   :  { %248 = vlog2.f32 %v331_v12  ;;  %v112_v42 = vmul.f32 -0.03125, %v352_v37  ;;  %v113_v44 = vmul.f32 -0.03125, %v355_v40  ;;  %v361_v45 = vmul.f32 %v166_v17, %v166_v17 }
   0x8   :  { %250 = vlog2.f32 %v333_v13  ;;  %v169_v51 = vmul.f32 -0.03125, %v358_v43  ;;  %vm156_vm4 = vcmp.lt.f32.partialorder %v331_v12, 0.5  ;;  %vm157_vm5 = vcmp.lt.f32.partialorder %v333_v13, 0.5 }
   0x9   :  { %252 = vpow2.f32 %v66_v15  ;;  %v114_v50 = vmul.f32 1.442695, %v112_v42  ;;  %v116_v52 = vmul.f32 1.442695, %v113_v44  ;;  %v170_v53 = vmul.f32 -0.03125, %v361_v45 }
   0xa   :  { %254 = vpow2.f32 %v68_v16  ;;  %v171_v62 = vmul.f32 1.442695, %v169_v51  ;;  %vm213_vm8 = vcmp.lt.f32.partialorder %v337_v18, 0.5  ;;  %vm214_vm9 = vcmp.lt.f32.partialorder %v339_v19, 0.5 }
   0xb   :  { %256 = vlog2.f32 %v337_v18  ;;  %v173_v2 = vmul.f32 1.442695, %v170_v53 }
   0xc   :  { %258 = vlog2.f32 %v339_v19 }
  0x14   :  { %v249_v20 = vpop.eup %248 }
  0x15   :  { %v251_v21 = vpop.eup %250  ;;  %v123_v25 = vmul.f32 0.6931472, %v249_v20 }
  0x16   :  { %v343_v22 = vpop.eup %252  ;;  %v125_v26 = vmul.f32 0.6931472, %v251_v21 }
  0x17   :  { %v345_v23 = vpop.eup %254  ;;  %v72_v24 = vadd.f32 1.0, %v343_v22  ;;  %v126_v29 = vmul.f32 %v123_v25, %v316_v3  ;;  %v87_v47 = vmul.f32 -0.5, %v343_v22  ;;  %v90_v60 = vand.u32 2147483647, %v343_v22 }
  0x18   :  { %v73_v27 = vadd.f32 1.0, %v345_v23  ;;  %v257_v28 = vpop.eup %256  ;;  %v127_v30 = vmul.f32 %v125_v26, %v318_v4  ;;  %v96_v49 = vmul.f32 -0.5, %v345_v23  ;;  %v99_v0 = vand.u32 2147483647, %v345_v23 }
  0x19   :  { %260 = vrcp.f32 %v72_v24  ;;  %v180_v31 = vmul.f32 0.6931472, %v257_v28  ;;  %v259_v32 = vpop.eup %258  ;;  %v128_v33 = vmul.f32 1.442695, %v126_v29  ;;  %v88_v58 = vadd.f32 1.0, %v87_v47 }
  0x1a   :  { %262 = vrcp.f32 %v73_v27  ;;  %v130_v34 = vmul.f32 1.442695, %v127_v30  ;;  %v182_v35 = vmul.f32 0.6931472, %v259_v32  ;;  %v97_v61 = vadd.f32 1.0, %v96_v49 }
  0x1b   :  { %264 = vlog2.f32 %v72_v24  ;;  %v183_v36 = vmul.f32 %v180_v31, %v316_v3  ;;  %v70_v5 = vmul.f32 2.0, %v343_v22  ;;  %v71_v6 = vmul.f32 2.0, %v345_v23 }
  0x1c   :  { %266 = vlog2.f32 %v73_v27  ;;  %v184_v38 = vmul.f32 %v182_v35, %v318_v4  ;;  %v89_v14 = vmul.f32 %v343_v22, %v88_v58  ;;  %vm376_vm0 = vcmp.lt.f32.partialorder %v90_v60, 0.0004427343 }
  0x1d   :  { %268 = vpow2.f32 %v128_v33  ;;  %v185_v39 = vmul.f32 1.442695, %v183_v36  ;;  %v98_v17 = vmul.f32 %v345_v23, %v97_v61  ;;  %vm381_vm1 = vcmp.lt.f32.partialorder %v99_v0, 0.0004427343 }
  0x1e   :  { %270 = vpow2.f32 %v130_v34  ;;  %v187_v41 = vmul.f32 1.442695, %v184_v38 }
  0x1f   :  { %272 = vpow2.f32 %v185_v39 }
  0x20   :  { %274 = vpow2.f32 %v187_v41 }
  0x21   :  { %276 = vpow2.f32 %v114_v50 }
  0x22   :  { %278 = vpow2.f32 %v116_v52 }
  0x26   :  { %v261_v46 = vpop.eup %260 }
  0x27   :  { %v263_v48 = vpop.eup %262  ;;  %v76_v55 = vmul.f32 14.0, %v261_v46 }
  0x28   :  { %v265_v54 = vpop.eup %264  ;;  %v77_v57 = vmul.f32 14.0, %v263_v48 }
  0x29   :  { %v267_v56 = vpop.eup %266  ;;  %v78_v7 = vmul.f32 %v76_v55, %v316_v3  ;;  %v86_v11 = vmul.f32 0.6931472, %v265_v54 }
  0x2a   :  { %v269_v59 = vpop.eup %268  ;;  %v79_v10 = vmul.f32 %v77_v57, %v318_v4  ;;  %v95_v16 = vmul.f32 0.6931472, %v267_v56 }
  0x2b   :  { %v271_v63 = vpop.eup %270  ;;  %v132_v1 = vadd.f32 1.0, %v269_v59  ;;  %v80_v21 = vmul.f32 %v78_v7, %v70_v5  ;;  %v92_v24 = vsel %vm376_vm0, %v89_v14, %v86_v11  ;;  %v135_v25 = vmul.f32 -0.5, %v269_v59 }
  0x2c   :  { %v141_v8 = vadd.f32 1.0, %v271_v63  ;;  %v372_v9 = vpop.eup %272  ;;  %v81_v22 = vmul.f32 %v79_v10, %v71_v6  ;;  %v101_v23 = vsel %vm381_vm1, %v98_v17, %v95_v16  ;;  %v144_v27 = vmul.f32 -0.5, %v271_v63 }
  0x2d   :  { %280 = vlog2.f32 %v132_v1  ;;  %v275_v20 = vpop.eup %274  ;;  %v189_v4 = vadd.f32 1.0, %v372_v9  ;;  %v82_v28 = vmul.f32 0.5, %v80_v21  ;;  %v102_v29 = vmul.f32 14.0, %v92_v24 }
  0x2e   :  { %282 = vlog2.f32 %v141_v8  ;;  %v198_v26 = vadd.f32 1.0, %v275_v20  ;;  %v83_v30 = vmul.f32 0.5, %v81_v22  ;;  %v103_v31 = vmul.f32 14.0, %v101_v23  ;;  %v277_v38 = vpop.eup %276 }
  0x2f   :  { %284 = vpow2.f32 %v171_v62  ;;  %v136_v32 = vadd.f32 1.0, %v135_v25  ;;  %v138_v33 = vand.u32 2147483647, %v269_v59  ;;  %v145_v34 = vadd.f32 1.0, %v144_v27  ;;  %v279_v41 = vpop.eup %278 }
  0x30   :  { %286 = vpow2.f32 %v173_v2  ;;  %v147_v35 = vand.u32 2147483647, %v271_v63  ;;  %v192_v36 = vmul.f32 -0.5, %v372_v9  ;;  %v201_v39 = vmul.f32 -0.5, %v275_v20 }
  0x31   :  { %288 = vlog2.f32 %v189_v4  ;;  %v104_v42 = vsub.f32 %v82_v28, %v102_v29  ;;  %v105_v44 = vsub.f32 %v83_v30, %v103_v31  ;;  %v137_v46 = vmul.f32 %v269_v59, %v136_v32 }
  0x32   :  { %290 = vlog2.f32 %v198_v26  ;;  %v152_v47 = vmul.f32 %v331_v12, %v80_v21  ;;  %v153_v48 = vmul.f32 %v333_v13, %v81_v22  ;;  %vm393_vm2 = vcmp.lt.f32.partialorder %v138_v33, 0.0004427343 }
  0x33   :  { %v146_v51 = vmul.f32 %v271_v63, %v145_v34  ;;  %vm397_vm3 = vcmp.lt.f32.partialorder %v147_v35, 0.0004427343  ;;  %v193_v53 = vadd.f32 1.0, %v192_v36  ;;  %v195_v56 = vand.u32 2147483647, %v372_v9 }
  0x34   :  { %v202_v57 = vadd.f32 1.0, %v201_v39  ;;  %v204_v60 = vand.u32 2147483647, %v275_v20  ;;  %v154_v63 = vsub.f32 %v152_v47, %v104_v42  ;;  %v155_v0 = vsub.f32 %v153_v48, %v105_v44 }
  0x35   :  { %v209_v1 = vmul.f32 %v337_v18, %v80_v21  ;;  %v194_v6 = vmul.f32 %v372_v9, %v193_v53  ;;  %v210_v7 = vmul.f32 %v339_v19, %v81_v22  ;;  %vm411_vm6 = vcmp.lt.f32.partialorder %v195_v56, 0.0004427343 }
  0x36   :  { %v203_v14 = vmul.f32 %v275_v20, %v202_v57  ;;  %v118_v16 = vmul.f32 %v277_v38, %v352_v37  ;;  %vm205_vm7 = vcmp.lt.f32.partialorder %v204_v60, 0.0004427343  ;;  %v119_v9 = vmul.f32 %v279_v41, %v355_v40 }
  0x37   :  { %v211_v4 = vsub.f32 %v209_v1, %v104_v42  ;;  %v212_v24 = vsub.f32 %v210_v7, %v105_v44 }
  0x3a   :  { %v281_v49 = vpop.eup %280 }
  0x3b   :  { %v283_v54 = vpop.eup %282  ;;  %v134_v55 = vmul.f32 0.6931472, %v281_v49 }
  0x3c   :  { %v285_v58 = vpop.eup %284  ;;  %v143_v59 = vmul.f32 0.6931472, %v283_v54 }
  0x3d   :  { %v287_v61 = vpop.eup %286  ;;  %v140_v62 = vsel %vm393_vm2, %v137_v46, %v134_v55  ;;  %v175_v22 = vmul.f32 %v285_v58, %v358_v43 }
  0x3e   :  { %v149_v2 = vsel %vm397_vm3, %v146_v51, %v143_v59  ;;  %v150_v5 = vmul.f32 14.0, %v140_v62  ;;  %v289_v8 = vpop.eup %288  ;;  %v176_v37 = vmul.f32 %v287_v61, %v361_v45 }
  0x3f   :  { %v151_v10 = vmul.f32 14.0, %v149_v2  ;;  %v291_v15 = vpop.eup %290  ;;  %v191_v17 = vmul.f32 0.6931472, %v289_v8 }
  0x40   :  { %v158_v3 = vsel %vm156_vm4, %v150_v5, %v154_v63  ;;  %v200_v21 = vmul.f32 0.6931472, %v291_v15 }
  0x41   :  { %v159_v13 = vsel %vm157_vm5, %v151_v10, %v155_v0  ;;  %v197_v20 = vsel %vm411_vm6, %v194_v6, %v191_v17  ;;  %v160_v23 = vadd.f32 %v158_v3, %v118_v16 }
  0x42   :  { %v206_v25 = vsel %vm205_vm7, %v203_v14, %v200_v21  ;;  %v207_v26 = vmul.f32 14.0, %v197_v20  ;;  %v161_v27 = vadd.f32 %v159_v13, %v119_v9 }
  0x43   :  { %v208_v40 = vmul.f32 14.0, %v206_v25 }
  0x44   :  { %v215_v12 = vsel %vm213_vm8, %v207_v26, %v211_v4 }
  0x45   :  { %v216_v28 = vsel %vm214_vm9, %v208_v40, %v212_v24  ;;  %v217_v29 = vadd.f32 %v215_v12, %v175_v22 }
  0x46   :  { %v218_v30 = vadd.f32 %v216_v28, %v176_v37 }
  0x47   :  { %v219_v43 = vadd.f32 %v217_v29, %v160_v23 }
  0x48   :  { %v220_v31 = vadd.f32 %v218_v30, %v161_v27 }
  0x4a   :  { %v222_v32 = vadd.f32 %v220_v31, %v219_v43 }
  0x4c   :  { %229 = vst [vmem:[%s432_s2] sm:$0xff] %v222_v32 }

</bundles_post_ra>
